<compile_context>
chip_gen: v6e
topology: v6e:2x2x1
jax: 0.10.0
libtpu: 0.0.40
codegen_flags: <defaults>
</compile_context>

<pallas_src>
import functools

import jax
import jax.numpy as jnp
from jax import lax
from jax.experimental import pallas as pl
from jax.experimental.pallas import tpu as pltpu


def _round_up(x, m):
    return (x + m - 1) // m * m


def _pad2(a, rows, cols):
    r, c = a.shape
    if r == rows and c == cols:
        return a
    return jnp.pad(a, ((0, rows - r), (0, cols - c)))


# --------------------------------------------------------------------------
# Pallas kernels: tiled matmul + bias (+ residual) (+ ReLU) epilogue.
# Grid = (M tiles, N tiles, K tiles); K is the reduction axis (last, "arbitrary").
# BN scale is already folded into the weight columns; bias is f32.
# --------------------------------------------------------------------------
def _mm_bias_kernel(p_ref, w_ref, b_ref, o_ref, acc_ref, *, relu):
    @pl.when(pl.program_id(2) == 0)
    def _():
        acc_ref[...] = jnp.zeros_like(acc_ref)

    acc_ref[...] += jnp.dot(p_ref[...], w_ref[...],
                            preferred_element_type=jnp.float32)

    @pl.when(pl.program_id(2) == pl.num_programs(2) - 1)
    def _():
        y = acc_ref[...] + b_ref[...]
        if relu:
            y = jnp.maximum(y, 0.0)
        o_ref[...] = y.astype(o_ref.dtype)


def _mm_bias_add_kernel(p_ref, w_ref, b_ref, res_ref, o_ref, acc_ref, *, relu):
    @pl.when(pl.program_id(2) == 0)
    def _():
        acc_ref[...] = jnp.zeros_like(acc_ref)

    acc_ref[...] += jnp.dot(p_ref[...], w_ref[...],
                            preferred_element_type=jnp.float32)

    @pl.when(pl.program_id(2) == pl.num_programs(2) - 1)
    def _():
        y = acc_ref[...] + b_ref[...] + res_ref[...].astype(jnp.float32)
        if relu:
            y = jnp.maximum(y, 0.0)
        o_ref[...] = y.astype(o_ref.dtype)


def _pick_tiles(M, K, N):
    """(8,128)-aligned tiles; K padded only to 128; >=2 parallel grid steps."""
    Np = _round_up(N, 128)
    Kp = _round_up(K, 128)

    tn = min(512, Np)
    while Np % tn:          # tn must divide Np (always terminates at 128)
        tn -= 128
    tk = min(1024, Kp)
    while Kp % tk:
        tk -= 128

    tm = min(512, _round_up(M, 8))
    Mp = _round_up(M, tm)
    # Megacore (v7x): keep the product of the two "parallel" axes >= 2 if possible.
    while tm > 8 and (Mp // tm) * (Np // tn) < 2:
        tm = max(8, _round_up(tm // 2, 8))
        Mp = _round_up(M, tm)
    return tm, tk, tn, Mp, Kp, Np


def fused_conv_matmul(p, w, bias, *, relu, residual=None):
    """Tiled (M,K)@(K,N) on the MXU, bf16 in / bf16 out, f32 accumulate.

    bias     : (1, N) f32, added in the K-finalize step (BN scale is pre-folded
               into the weight columns).
    residual : optional (M, N) bf16 tensor added before the final ReLU.
    """
    # Cast BEFORE padding so no f32 padded copies are materialized.
    p = p.astype(jnp.bfloat16)
    w = w.astype(jnp.bfloat16)

    M, K = p.shape
    Kw, N = w.shape
    assert Kw == K, (Kw, K)

    tm, tk, tn, Mp, Kp, Np = _pick_tiles(M, K, N)

    p_p = _pad2(p, Mp, Kp)
    w_p = _pad2(w, Kp, Np)
    b_p = _pad2(bias.astype(jnp.float32), 1, Np)

    in_specs = [
        pl.BlockSpec((tm, tk), lambda i, j, k: (i, k)),
        pl.BlockSpec((tk, tn), lambda i, j, k: (k, j)),
        pl.BlockSpec((1, tn), lambda i, j, k: (0, j)),
    ]
    args = [p_p, w_p, b_p]

    if residual is not None:
        args.append(_pad2(residual.astype(jnp.bfloat16), Mp, Np))
        in_specs.append(pl.BlockSpec((tm, tn), lambda i, j, k: (i, j)))
        kernel = functools.partial(_mm_bias_add_kernel, relu=relu)
    else:
        kernel = functools.partial(_mm_bias_kernel, relu=relu)

    out = pl.pallas_call(
        kernel,
        out_shape=jax.ShapeDtypeStruct((Mp, Np), jnp.bfloat16),
        grid=(Mp // tm, Np // tn, Kp // tk),
        in_specs=in_specs,
        out_specs=pl.BlockSpec((tm, tn), lambda i, j, k: (i, j)),
        scratch_shapes=[pltpu.VMEM((tm, tn), jnp.float32)],
        compiler_params=pltpu.CompilerParams(
            dimension_semantics=("parallel", "parallel", "arbitrary"),
            vmem_limit_bytes=32 * 1024 * 1024),
    )(*args)

    # Skip the slice entirely when no padding was added (lane-dense passthrough).
    if Mp != M or Np != N:
        out = out[:M, :N]
    return out


# --------------------------------------------------------------------------
# Glue: im2col (bf16), weight / BN parameter reshaping (plain JAX)
# --------------------------------------------------------------------------
def im2col(x_nhwc, kh, kw, stride, pad):
    """Patch matrix (N*Ho*Wo, kh*kw*C) in the input dtype (bf16 here)."""
    N, H, W, C = x_nhwc.shape
    xp = jnp.pad(x_nhwc, ((0, 0), (pad, pad), (pad, pad), (0, 0)))
    Ho = (H + 2 * pad - kh) // stride + 1
    Wo = (W + 2 * pad - kw) // stride + 1
    cols = []
    for i in range(kh):
        for j in range(kw):
            cols.append(xp[:, i: i + stride * Ho: stride,
                           j: j + stride * Wo: stride, :])
    patches = jnp.concatenate(cols, axis=-1)  # (N, Ho, Wo, kh*kw*C)
    return patches.reshape(N * Ho * Wo, kh * kw * C), (N, Ho, Wo)


def conv_weight_to_mat(w_oihw):
    """(Cout, Cin, kh, kw) -> (kh*kw*Cin, Cout), matching im2col column order."""
    cout = w_oihw.shape[0]
    return jnp.transpose(w_oihw, (2, 3, 1, 0)).reshape(-1, cout)


def fold_bn(gamma, beta, mean, var, eps=1e-5):
    scale = gamma / jnp.sqrt(var + eps)
    bias = beta - mean * scale
    return (scale.reshape(1, -1).astype(jnp.float32),
            bias.reshape(1, -1).astype(jnp.float32))


# --------------------------------------------------------------------------
# BasicBlock (Pallas-backed)
# --------------------------------------------------------------------------
class BasicBlockPallas:
    expansion = 1

    def __init__(self, key, in_channels, out_channels, stride=1):
        self.in_channels = in_channels
        self.out_channels = out_channels * self.expansion
        self.stride = stride
        self.has_shortcut = (stride != 1) or (in_channels != self.out_channels)

        ks = jax.random.split(key, 16)

        def bn_params(k, c):
            k1, k2, k3, k4 = jax.random.split(k, 4)
            gamma = jax.random.uniform(k1, (c,), jnp.float32, 0.5, 1.5)
            beta = 0.1 * jax.random.normal(k2, (c,), jnp.float32)
            mean = 0.1 * jax.random.normal(k3, (c,), jnp.float32)
            var = jax.random.uniform(k4, (c,), jnp.float32, 0.5, 1.5)
            return gamma, beta, mean, var

        # Raw parameters (kept for the pure-JAX reference).
        self.w1 = 0.1 * jax.random.normal(ks[0], (out_channels, in_channels, 3, 3), jnp.float32)
        self.bn1 = bn_params(ks[1], out_channels)
        self.w2 = 0.1 * jax.random.normal(ks[2], (self.out_channels, out_channels, 3, 3), jnp.float32)
        self.bn2 = bn_params(ks[3], self.out_channels)
        if self.has_shortcut:
            self.ws = 0.1 * jax.random.normal(ks[4], (self.out_channels, in_channels, 1, 1), jnp.float32)
            self.bns = bn_params(ks[5], self.out_channels)

        # Kernel-side operands: BN scale folded into bf16 weight columns,
        # shortcut stacked along K so it rides the main pipelined reduction.
        s1, b1 = fold_bn(*self.bn1)
        self.w1_mat = (conv_weight_to_mat(self.w1) * s1).astype(jnp.bfloat16)
        self.b1 = b1

        s2, b2 = fold_bn(*self.bn2)
        w2m = conv_weight_to_mat(self.w2) * s2
        if self.has_shortcut:
            ss, bs = fold_bn(*self.bns)
            wsm = conv_weight_to_mat(self.ws) * ss
            self.w2_mat = jnp.concatenate([w2m, wsm], axis=0).astype(jnp.bfloat16)
            self.b2 = b2 + bs
        else:
            self.w2_mat = w2m.astype(jnp.bfloat16)
            self.b2 = b2

        self._forward_jit = jax.jit(self._forward)

    def _forward(self, x_nchw):
        # NCHW -> NHWC at the block boundary (PyTorch layout contract), bf16.
        x = jnp.transpose(x_nchw, (0, 2, 3, 1)).astype(jnp.bfloat16)

        # conv3x3(stride) + BN1 + ReLU (tiled MXU matmul, fused epilogue).
        p1, (N, Ho, Wo) = im2col(x, 3, 3, self.stride, 1)
        y1 = fused_conv_matmul(p1, self.w1_mat, self.b1, relu=True)  # bf16 (M, Cmid)
        y1 = y1.reshape(N, Ho, Wo, -1)

        # conv3x3(1) patches (bf16).
        p2, _ = im2col(y1, 3, 3, 1, 1)

        if self.has_shortcut:
            # 1x1-conv shortcut fused into the same K reduction: [p2 | xs].
            xs = x[:, ::self.stride, ::self.stride, :][:, :Ho, :Wo, :]
            xs = xs.reshape(N * Ho * Wo, -1)
            lhs = jnp.concatenate([p2, xs], axis=1)
            out = fused_conv_matmul(lhs, self.w2_mat, self.b2, relu=True)
        else:
            # Identity residual streamed as bf16, added in the epilogue.
            res = x.reshape(N * Ho * Wo, -1)
            out = fused_conv_matmul(p2, self.w2_mat, self.b2, relu=True,
                                    residual=res)

        out = out.reshape(N, Ho, Wo, -1)
        # Back to NCHW, f32 (PyTorch module contract); cast fuses with transpose.
        return jnp.transpose(out, (0, 3, 1, 2)).astype(jnp.float32)

    def __call__(self, x_nchw):
        return self._forward_jit(x_nchw)


# --------------------------------------------------------------------------
# Pure-JAX reference (lax conv) for correctness check
# --------------------------------------------------------------------------
def reference_block(block, x, eps=1e-5):
    def conv(x, w, stride, pad):
        return lax.conv_general_dilated(
            x, w, (stride, stride), [(pad, pad), (pad, pad)],
            dimension_numbers=("NCHW", "OIHW", "NCHW"))

    def bn(x, params):
        g, b, m, v = params
        return (g[None, :, None, None] * (x - m[None, :, None, None])
                / jnp.sqrt(v[None, :, None, None] + eps) + b[None, :, None, None])

    y = jnp.maximum(bn(conv(x, block.w1, block.stride, 1), block.bn1), 0.0)
    y = bn(conv(y, block.w2, 1, 1), block.bn2)
    if block.has_shortcut:
        sc = bn(conv(x, block.ws, block.stride, 0), block.bns)
    else:
        sc = x
    return jnp.maximum(y + sc, 0.0)


if __name__ == "__main__":
    key = jax.random.PRNGKey(0)
    kx1, kp1, kx2, kp2 = jax.random.split(key, 4)

    # Case 1: downsampling block with fused 1x1-conv shortcut (stride=2).
    x1 = jax.random.normal(kx1, (2, 4, 16, 16), jnp.float32)
    blk1 = BasicBlockPallas(kp1, in_channels=4, out_channels=8, stride=2)
    out1 = jax.block_until_ready(blk1(x1))
    ref1 = jax.block_until_ready(reference_block(blk1, x1))
    assert out1.shape == ref1.shape == (2, 8, 8, 8)
    # bf16 operands / outputs (f32 accumulate) -> loosened tolerance vs f32 ref.
    assert jnp.allclose(out1, ref1, atol=5e-2, rtol=5e-2), float(jnp.max(jnp.abs(out1 - ref1)))

    # Case 2: identity-shortcut block (stride=1, in == out channels).
    x2 = jax.random.normal(kx2, (2, 8, 16, 16), jnp.float32)
    blk2 = BasicBlockPallas(kp2, in_channels=8, out_channels=8, stride=1)
    out2 = jax.block_until_ready(blk2(x2))
    ref2 = jax.block_until_ready(reference_block(blk2, x2))
    assert out2.shape == ref2.shape == (2, 8, 16, 16)
    assert jnp.allclose(out2, ref2, atol=5e-2, rtol=5e-2), float(jnp.max(jnp.abs(out2 - ref2)))

    print("KERNEL_OK")
</pallas_src>

<mosaic_0001>
module attributes {stable_mosaic.version = 11 : i64} {
  func.func @_mm_bias_kernel(%arg0: i32, %arg1: i32, %arg2: i32, %arg3: memref<64x128xbf16, #tpu.memory_space<vmem>>, %arg4: memref<128x128xbf16, #tpu.memory_space<vmem>>, %arg5: memref<1x128xf32, #tpu.memory_space<vmem>>, %arg6: memref<64x128xbf16, #tpu.memory_space<vmem>>, %arg7: memref<64x128xf32, #tpu.memory_space<vmem>>) attributes {dimension_semantics = [#tpu.dimension_semantics<parallel>, #tpu.dimension_semantics<parallel>, #tpu.dimension_semantics<arbitrary>], iteration_bounds = array<i64: 2, 1, 1>, scalar_prefetch = 0 : i64, scratch_operands = 1 : i64, tpu.core_type = #tpu.core_type<tc>, window_params = [{transform_indices = @transform_0, window_bounds = array<i64: 64, 128>}, {transform_indices = @transform_1, window_bounds = array<i64: 128, 128>}, {transform_indices = @transform_2, window_bounds = array<i64: 1, 128>}, {transform_indices = @transform_3, window_bounds = array<i64: 64, 128>}]} {
    %c0_i32 = arith.constant 0 : i32
    %0 = arith.cmpi eq, %arg2, %c0_i32 : i32
    %1 = arith.extui %0 : i1 to i32
    %c0_i32_0 = arith.constant 0 : i32
    %2 = arith.cmpi ne, %1, %c0_i32_0 : i32
    scf.if %2 {
      %cst_10 = arith.constant 0.000000e+00 : f32
      %12 = vector.broadcast %cst_10 : f32 to vector<64x128xf32>
      %c0_11 = arith.constant 0 : index
      %c0_12 = arith.constant 0 : index
      %13 = vector.load %arg7[%c0_11, %c0_12] : memref<64x128xf32, #tpu.memory_space<vmem>>, vector<64x128xf32>
      tpu.vector_store %arg7[%c0_11, %c0_12], %12 {strides = array<i32>} : memref<64x128xf32, #tpu.memory_space<vmem>>, vector<64x128xf32>,
    } else {
    }
    %c0 = arith.constant 0 : index
    %c0_1 = arith.constant 0 : index
    %3 = vector.load %arg7[%c0, %c0_1] : memref<64x128xf32, #tpu.memory_space<vmem>>, vector<64x128xf32>
    %c0_2 = arith.constant 0 : index
    %c0_3 = arith.constant 0 : index
    %4 = vector.load %arg3[%c0_2, %c0_3] : memref<64x128xbf16, #tpu.memory_space<vmem>>, vector<64x128xbf16>
    %c0_4 = arith.constant 0 : index
    %c0_5 = arith.constant 0 : index
    %5 = vector.load %arg4[%c0_4, %c0_5] : memref<128x128xbf16, #tpu.memory_space<vmem>>, vector<128x128xbf16>
    %cst = arith.constant dense<0.000000e+00> : vector<64x128xf32>
    %6 = tpu.matmul %4, %5, %cst {dimension_numbers = #tpu.dot_dimension_numbers<[1], [0], [0], [1], [0, 0, 1, 1], [], []>} : vector<64x128xbf16>, vector<128x128xbf16>, vector<64x128xf32> -> vector<64x128xf32>
    %7 = arith.addf %3, %6 : vector<64x128xf32>
    %c0_6 = arith.constant 0 : index
    %c0_7 = arith.constant 0 : index
    %8 = vector.load %arg7[%c0_6, %c0_7] : memref<64x128xf32, #tpu.memory_space<vmem>>, vector<64x128xf32>
    tpu.vector_store %arg7[%c0_6, %c0_7], %7 {strides = array<i32>} : memref<64x128xf32, #tpu.memory_space<vmem>>, vector<64x128xf32>,
    %c0_i32_8 = arith.constant 0 : i32
    %9 = arith.cmpi eq, %arg2, %c0_i32_8 : i32
    %10 = arith.extui %9 : i1 to i32
    %c0_i32_9 = arith.constant 0 : i32
    %11 = arith.cmpi ne, %10, %c0_i32_9 : i32
    scf.if %11 {
      %c0_10 = arith.constant 0 : index
      %c0_11 = arith.constant 0 : index
      %12 = vector.load %arg7[%c0_10, %c0_11] : memref<64x128xf32, #tpu.memory_space<vmem>>, vector<64x128xf32>
      %c0_12 = arith.constant 0 : index
      %c0_13 = arith.constant 0 : index
      %13 = vector.load %arg5[%c0_12, %c0_13] : memref<1x128xf32, #tpu.memory_space<vmem>>, vector<1x128xf32>
      %14 = vector.broadcast %13 : vector<1x128xf32> to vector<64x128xf32>
      %15 = arith.addf %12, %14 : vector<64x128xf32>
      %cst_14 = arith.constant 0.000000e+00 : f32
      %16 = vector.broadcast %cst_14 : f32 to vector<64x128xf32>
      %17 = arith.maximumf %15, %16 : vector<64x128xf32>
      %18 = arith.truncf %17 : vector<64x128xf32> to vector<64x128xbf16>
      %c0_15 = arith.constant 0 : index
      %c0_16 = arith.constant 0 : index
      %19 = vector.load %arg6[%c0_15, %c0_16] : memref<64x128xbf16, #tpu.memory_space<vmem>>, vector<64x128xbf16>
      tpu.vector_store %arg6[%c0_15, %c0_16], %18 {strides = array<i32>} : memref<64x128xbf16, #tpu.memory_space<vmem>>, vector<64x128xbf16>,
    } else {
    }
    return
  }
  func.func @transform_0(%arg0: i32, %arg1: i32, %arg2: i32) -> (i32, i32) {
    %c0_i32 = arith.constant 0 : i32
    return %arg0, %arg2 : i32, i32
  }
  func.func @transform_1(%arg0: i32, %arg1: i32, %arg2: i32) -> (i32, i32) {
    %c0_i32 = arith.constant 0 : i32
    return %arg2, %arg1 : i32, i32
  }
  func.func @transform_2(%arg0: i32, %arg1: i32, %arg2: i32) -> (i32, i32) {
    %c0_i32 = arith.constant 0 : i32
    %c0_i32_0 = arith.constant 0 : i32
    return %c0_i32, %arg1 : i32, i32
  }
  func.func @transform_3(%arg0: i32, %arg1: i32, %arg2: i32) -> (i32, i32) {
    %c0_i32 = arith.constant 0 : i32
    return %arg0, %arg1 : i32, i32
  }
}

</mosaic_0001>

<bundles_post_ra>
// kernel: _forward.2
= control target key start
LH: loop header
LB: loop body
LE: loop exit
PB: predicated region body
PF: predicated region fallthrough
CT: control target
= control target key end

     0   :  { %s839_s12 = smov 0   ;;  %s841_s13 = smov 0   ;;  %s912_s0 = inlined_call_operand.vmem [shape: bf16[128,128], index: 0, kind: input, shape index: {}]   ;;  %s913_s1 = inlined_call_operand.vmem [shape: bf16[128,128], index: 1, kind: input, shape index: {}]   ;;  %s914_s2 = inlined_call_operand.vmem [shape: f32[1,128], index: 2, kind: input, shape index: {}]   ;;  %s915_s3 = inlined_call_operand.vmem [shape: bf16[128,128], index: 3, kind: output, shape index: {}]  }
   0x1   :  { %s843_s14 = smov 0  }
   0x2 LB: > { %s32_s15 = sadd.s32 1, %s813_s13  ;;  %p648_p0 = scmp.ge.s32.totalorder %s817_s14, 1  ;;  %s817_s14 = sphi %s843_s14, %s13_s14   ;;  %s813_s13 = sphi %s841_s13, %s917_s13   ;;  %s809_s12 = sphi %s839_s12, %s916_s12  }
   0x3   : > { %p34_p1 = scmp.ge.s32.totalorder %s32_s15, 2  ;;  %p188_p2 = scmp.lt.s32.totalorder %s817_s14, 3 }
   0x5   : > { %s919_s15 = smov (%p34_p1, %s32_s15), 0  ;;  %p189_p3 = pnand %p648_p0, %p188_p2 }
   0x6   : > { %s649_s18 = sshll.u32 (!%p189_p3), %s809_s12, 3 }
   0x7   : > { %192 = sbr.rel (%p189_p3) target bundleno = 251 (0xfb), region = 32  ;;  %p230_p4 = scmp.lt.s32.totalorder (!%p189_p3), %s649_s18, 15 }
   0xc   : > { %v783_v0 = vld [vmem:[%s913_s1 + $0x38] sm:$0xff]   ;;  %v784_v1 = vld [vmem:[%s913_s1 + $0x30] sm:$0xff]   ;;  %s921_s18 = smov (!%p230_p4, %s649_s18), 15  ;;  %v785_v2 = vld [vmem:[%s913_s1 + $0x28] sm:$0xff]  }
   0xd   : > { %719 = vmatprep.subr.bf16.mxu0 %v783_v0  ;;  %743 = vmatprep.subr.bf16.mxu1 %v783_v0  ;;  %s650_s23 = sshll.u32 %s921_s18, 2  ;;  %v786_v3 = vld [vmem:[%s913_s1 + $0x20] sm:$0xff]   ;;  %v787_v6 = vld [vmem:[%s913_s1 + $0x18] sm:$0xff]   ;;  %v788_v7 = vld [vmem:[%s913_s1 + $0x10] sm:$0xff]  }
   0xe   : > { %720 = vmatpush3.bf16.msra.mxu0 %v783_v0  ;;  %751 = vmatpush3.bf16.msra.mxu1 %v783_v0  ;;  %s874_s26 = scalar_lea.vmem %s912_s0, %s650_s23  ;;  %v789_v8 = vld [vmem:[%s913_s1 + $0x8] sm:$0xff]   ;;  %v790_v9 = vld [vmem:[%s913_s1] sm:$0xff]   ;;  %s257_s17 = scalar_lea.vmem %s915_s3, %s650_s23 }
   0xf   : > { %721 = vmatprep.subr.bf16.mxu0 %v784_v1  ;;  %744 = vmatprep.subr.bf16.mxu1 %v784_v1  ;;  %v791_v4 = vld [vmem:[%s874_s26] sm:$0xff]   ;;  %v792_v5 = vld [vmem:[%s874_s26 + $0x10] sm:$0xff]   ;;  %v793_v10 = vld [vmem:[%s874_s26 + $0x8] sm:$0xff]  }
  0x10   : > { %735 = vmatprep.mubr.bf16.mxu0 %v791_v4  ;;  %739 = vmatprep.mubr.bf16.mxu1 %v792_v5  ;;  %v794_v11 = vld [vmem:[%s874_s26 + $0x18] sm:$0xff]   ;;  %v665_v12 = vld [vmem:[%s914_s2] ss:$0 sm:$0xff] }
  0x12   : > { %722 = vmatpush3.bf16.msra.mxu0 %v784_v1  ;;  %752 = vmatpush3.bf16.msra.mxu1 %v784_v1 }
  0x13   : > { %723 = vmatprep.subr.bf16.mxu0 %v785_v2  ;;  %745 = vmatprep.subr.bf16.mxu1 %v785_v2 }
  0x16   : > { %724 = vmatpush3.bf16.msra.mxu0 %v785_v2  ;;  %753 = vmatpush3.bf16.msra.mxu1 %v785_v2 }
  0x17   : > { %725 = vmatprep.subr.bf16.mxu0 %v786_v3  ;;  %746 = vmatprep.subr.bf16.mxu1 %v786_v3 }
  0x1a   : > { %726 = vmatpush3.bf16.msra.mxu0 %v786_v3  ;;  %754 = vmatpush3.bf16.msra.mxu1 %v786_v3 }
  0x1b   : > { %727 = vmatprep.subr.bf16.mxu0 %v787_v6  ;;  %747 = vmatprep.subr.bf16.mxu1 %v787_v6 }
  0x1e   : > { %728 = vmatpush3.bf16.msra.mxu0 %v787_v6  ;;  %755 = vmatpush3.bf16.msra.mxu1 %v787_v6 }
  0x1f   : > { %729 = vmatprep.subr.bf16.mxu0 %v788_v7  ;;  %748 = vmatprep.subr.bf16.mxu1 %v788_v7 }
  0x22   : > { %730 = vmatpush3.bf16.msra.mxu0 %v788_v7  ;;  %756 = vmatpush3.bf16.msra.mxu1 %v788_v7 }
  0x23   : > { %731 = vmatprep.subr.bf16.mxu0 %v789_v8  ;;  %749 = vmatprep.subr.bf16.mxu1 %v789_v8 }
  0x26   : > { %732 = vmatpush3.bf16.msra.mxu0 %v789_v8  ;;  %757 = vmatpush3.bf16.msra.mxu1 %v789_v8 }
  0x27   : > { %733 = vmatprep.subr.bf16.mxu0 %v790_v9  ;;  %750 = vmatprep.subr.bf16.mxu1 %v790_v9 }
  0x2a   : > { %734 = vmatpush3.bf16.msra.mxu0 %v790_v9  ;;  %758 = vmatpush3.bf16.msra.mxu1 %v790_v9 }
  0x2d   : > { %736 = vmatmul.mubr.bf16.vlgmr.msra.gmra.mxu0 %v793_v10  ;;  %740 = vmatmul.mubr.bf16.vlgmr.msra.gmra.mxu1 %v794_v11 }
  0xed   : > { %v737_v13 = vpop.f32.mrf.mxu0  ;;  %v741_v14 = vpop.f32.mrf.mxu1 }
  0xee   : > { %v477_v15 = vadd.f32 %v737_v13, %v665_v12  ;;  %v481_v16 = vadd.f32 %v741_v14, %v665_v12 }
  0xef   : > { %v410_v17 = vpop.f32.mrf.mxu0  ;;  %v426_v18 = vpop.f32.mrf.mxu1 }
  0xf0   : > { %v475_v19 = vadd.f32 %v665_v12, %v410_v17  ;;  %v479_v20 = vadd.f32 %v665_v12, %v426_v18  ;;  %v485_v25 = vmax.f32 %v477_v15, 0.0  ;;  %v489_v26 = vmax.f32 %v481_v16, 0.0 }
  0xf1   : > { %v738_v21 = vpop.f32.mrf.mxu0  ;;  %v742_v22 = vpop.f32.mrf.mxu1 }
  0xf2   : > { %v478_v23 = vadd.f32 %v738_v21, %v665_v12  ;;  %v482_v24 = vadd.f32 %v742_v22, %v665_v12  ;;  %v483_v33 = vmax.f32 %v475_v19, 0.0  ;;  %v487_v34 = vmax.f32 %v479_v20, 0.0 }
  0xf3   : > { %v413_v27 = vpop.f32.mrf.mxu0  ;;  %v429_v28 = vpop.f32.mrf.mxu1 }
  0xf4   : > { %v486_v29 = vmax.f32 %v478_v23, 0.0  ;;  %v490_v30 = vmax.f32 %v482_v24, 0.0  ;;  %v476_v31 = vadd.f32 %v665_v12, %v413_v27  ;;  %v480_v32 = vadd.f32 %v665_v12, %v429_v28 }
  0xf6   : > { %v692_v35 = vpack.c.bf16 %v486_v29, %v485_v25  ;;  %v702_v36 = vpack.c.bf16 %v490_v30, %v489_v26  ;;  %v484_v37 = vmax.f32 %v476_v31, 0.0  ;;  %v488_v38 = vmax.f32 %v480_v32, 0.0 }
  0xf8   : > { %704 = vst [vmem:[%s257_s17 + $0x8] sm:$0xff] %v692_v35   ;;  %706 = vst [vmem:[%s257_s17 + $0x18] sm:$0xff] %v702_v36   ;;  %v687_v39 = vpack.c.bf16 %v484_v37, %v483_v33  ;;  %v697_v40 = vpack.c.bf16 %v488_v38, %v487_v34 }
  0xfa   : > { %688 = vst [vmem:[%s257_s17] sm:$0xff] %v687_v39   ;;  %705 = vst [vmem:[%s257_s17 + $0x10] sm:$0xff] %v697_v40  }
  0xfb PF: > { %s13_s14 = sadd.s32 1, %s817_s14   ;;  %s916_s12 = smov %s813_s13 }
  0xfc   : > { %p10_p5 = scmp.ge.s32.totalorder %s13_s14, 4   ;;  %s917_s13 = smov %s919_s15 }
  0xfe   :  { %12 = sbr.rel (!%p10_p5) target bundleno = 2 (0x2), region = 76 }

</bundles_post_ra>
